<compile_context>
chip_gen: v7x
topology: tpu7x:2x2x1
jax: 0.10.0
libtpu: 0.0.40
codegen_flags: <defaults>
</compile_context>

<pallas_src>
import jax
import jax.numpy as jnp
from jax.experimental import pallas as pl
from jax.experimental.pallas import tpu as pltpu


def _bias_kernel(x_ref, b_ref, o_ref):
    # b_ref is (tr, 1) or (1, tcol); broadcasts against the (tr, tcol) x tile on the VPU.
    o_ref[...] = x_ref[...] + b_ref[...]


def _round_down(v, m):
    return (v // m) * m


def bias_forward(x: jax.Array, bias: jax.Array,
                 *, target_block_bytes: int = 2 * 1024 * 1024) -> jax.Array:
    """x: (N, C, H, W); bias: (1, C, 1, 1). Returns x + bias (broadcast over N, H, W)."""
    N, C, H, W = x.shape
    assert bias.shape == (1, C, 1, 1)

    out_dtype = jnp.result_type(x.dtype, bias.dtype)      # match PyTorch promotion
    itemsize = jnp.dtype(x.dtype).itemsize
    out_itemsize = jnp.dtype(out_dtype).itemsize
    sublane = max(8, 32 // itemsize)                       # 8 f32, 16 bf16, 32 int8/fp8

    HW = H * W
    row_bias = (HW % 128 == 0)
    if row_bias:
        # Lane-dense (N*C, H*W) view: one bias value per row.
        Rows, Cols = N * C, HW
        x2d = x.reshape(Rows, Cols)
        b2d = jnp.broadcast_to(bias.reshape(1, C), (N, C)).reshape(Rows, 1).astype(out_dtype)
    else:
        # H*W not a 128-multiple: flatten per-sample to (N, C*H*W) for the densest
        # possible lane dim; bias becomes a (1, C*H*W) row shared by all samples.
        Rows, Cols = N, C * HW
        x2d = x.reshape(Rows, Cols)
        b2d = jnp.broadcast_to(bias.reshape(C, 1), (C, HW)).reshape(1, Cols).astype(out_dtype)

    # ---- tile selection ------------------------------------------------------
    tr = min(sublane, Rows)
    if Cols * itemsize * tr > target_block_bytes and Cols >= 256:
        # Even a minimal row tile exceeds the budget: tile the lane axis too.
        tcol = max(128, _round_down(target_block_bytes // (tr * itemsize), 128))
        tcol = min(tcol, Cols)
    else:
        tcol = Cols
        bytes_per_row = max(1, Cols * itemsize)
        tr = max(sublane, _round_down(target_block_bytes // bytes_per_row, sublane))
        tr = min(tr, Rows)

    # Arrays > ~1 MiB must get >= 4 grid steps (pipeline overlap + v7x dual-TC work).
    def _steps(tr_, tc_):
        return pl.cdiv(Rows, tr_) * pl.cdiv(Cols, tc_)

    total_bytes = Rows * Cols * itemsize
    if total_bytes > (1 << 20):
        while _steps(tr, tcol) < 4:
            if tr > sublane:
                tr = max(sublane, _round_down(tr // 2, sublane))
            elif tcol >= 256:
                tcol = max(128, _round_down(tcol // 2, 128))
            else:
                break

    grid_rows = pl.cdiv(Rows, tr)
    grid_cols = pl.cdiv(Cols, tcol)

    # ---- block specs: bias block index constant along the inner grid axis -----
    if row_bias:
        grid = (grid_rows, grid_cols)              # rows outer, cols inner
        x_spec = pl.BlockSpec((tr, tcol), lambda i, j: (i, j))
        b_spec = pl.BlockSpec((tr, 1), lambda i, j: (i, 0))
        o_spec = pl.BlockSpec((tr, tcol), lambda i, j: (i, j))
        bias_block_bytes = tr * out_itemsize
    else:
        grid = (grid_cols, grid_rows)              # cols outer, rows inner
        x_spec = pl.BlockSpec((tr, tcol), lambda j, i: (i, j))
        b_spec = pl.BlockSpec((1, tcol), lambda j, i: (0, j))
        o_spec = pl.BlockSpec((tr, tcol), lambda j, i: (i, j))
        bias_block_bytes = tcol * out_itemsize

    # ---- explicit VMEM budget: 2 buffers x (x tile + out tile) + bias + slack --
    x_block_bytes = tr * tcol * itemsize
    o_block_bytes = tr * tcol * out_itemsize
    vmem_needed = 2 * (x_block_bytes + o_block_bytes + bias_block_bytes)
    vmem_limit = int(min(max(vmem_needed + (2 << 20), 8 << 20), 32 << 20))

    cost = pl.CostEstimate(
        flops=Rows * Cols,
        transcendentals=0,
        bytes_accessed=Rows * Cols * (itemsize + out_itemsize) + int(b2d.size) * out_itemsize,
    )

    out2d = pl.pallas_call(
        _bias_kernel,
        out_shape=jax.ShapeDtypeStruct((Rows, Cols), out_dtype),
        grid_spec=pl.GridSpec(
            grid=grid,
            in_specs=[x_spec, b_spec],
            out_specs=o_spec,
        ),
        compiler_params=pltpu.CompilerParams(
            dimension_semantics=("parallel", "parallel"),
            vmem_limit_bytes=vmem_limit,
        ),
        cost_estimate=cost,
    )(x2d, b2d)

    return out2d.reshape(N, C, H, W)


if __name__ == "__main__":
    key = jax.random.PRNGKey(0)

    # Main case: H*W is a multiple of 128 (lane-dense (N*C, H*W) path).
    N, C, H, W = 2, 4, 16, 16
    x = jax.random.normal(key, (N, C, H, W), dtype=jnp.float32)
    # nn.Parameter(torch.zeros(1, C, 1, 1)) initializes to zeros; use a small
    # deterministic nonzero bias so the add is actually exercised.
    bias = jnp.arange(C, dtype=jnp.float32).reshape(1, C, 1, 1) * 0.1

    out = bias_forward(x, bias)
    jax.block_until_ready(out)
    expected = x + bias
    assert out.shape == (N, C, H, W)
    assert out.dtype == expected.dtype
    assert jnp.allclose(out, expected, atol=1e-6), "mismatch vs reference (128-multiple HW)"

    # Secondary case: H*W NOT a multiple of 128 ((N, C*H*W) flattened path).
    H2, W2 = 9, 9
    x2 = jax.random.normal(jax.random.PRNGKey(1), (N, C, H2, W2), dtype=jnp.float32)
    out2 = bias_forward(x2, bias)
    jax.block_until_ready(out2)
    assert jnp.allclose(out2, x2 + bias, atol=1e-6), "mismatch vs reference (ragged HW)"

    print("KERNEL_OK")
</pallas_src>

<mosaic_0001>
module attributes {stable_mosaic.version = 11 : i64} {
  func.func @_bias_kernel(%arg0: i32, %arg1: i32, %arg2: memref<8x256xf32, #tpu.memory_space<vmem>>, %arg3: memref<8x1xf32, #tpu.memory_space<vmem>>, %arg4: memref<8x256xf32, #tpu.memory_space<vmem>>) attributes {dimension_semantics = [#tpu.dimension_semantics<parallel>, #tpu.dimension_semantics<parallel>], iteration_bounds = array<i64: 1, 1>, scalar_prefetch = 0 : i64, scratch_operands = 0 : i64, tpu.core_type = #tpu.core_type<tc>, window_params = [{transform_indices = @transform_0, window_bounds = array<i64: 8, 256>}, {transform_indices = @transform_1, window_bounds = array<i64: 8, 1>}, {transform_indices = @transform_2, window_bounds = array<i64: 8, 256>}]} {
    %c0 = arith.constant 0 : index
    %c0_0 = arith.constant 0 : index
    %0 = vector.load %arg2[%c0, %c0_0] : memref<8x256xf32, #tpu.memory_space<vmem>>, vector<8x256xf32>
    %c0_1 = arith.constant 0 : index
    %c0_2 = arith.constant 0 : index
    %1 = vector.load %arg3[%c0_1, %c0_2] : memref<8x1xf32, #tpu.memory_space<vmem>>, vector<8x1xf32>
    %2 = vector.broadcast %1 : vector<8x1xf32> to vector<8x256xf32>
    %3 = arith.addf %0, %2 : vector<8x256xf32>
    %c0_3 = arith.constant 0 : index
    %c0_4 = arith.constant 0 : index
    %4 = vector.load %arg4[%c0_3, %c0_4] : memref<8x256xf32, #tpu.memory_space<vmem>>, vector<8x256xf32>
    tpu.vector_store %arg4[%c0_3, %c0_4], %3 {strides = array<i32>} : memref<8x256xf32, #tpu.memory_space<vmem>>, vector<8x256xf32>,
    return
  }
  func.func @transform_0(%arg0: i32, %arg1: i32) -> (i32, i32) {
    %c0_i32 = arith.constant 0 : i32
    return %arg0, %arg1 : i32, i32
  }
  func.func @transform_1(%arg0: i32, %arg1: i32) -> (i32, i32) {
    %c0_i32 = arith.constant 0 : i32
    %c0_i32_0 = arith.constant 0 : i32
    return %arg0, %c0_i32 : i32, i32
  }
  func.func @transform_2(%arg0: i32, %arg1: i32) -> (i32, i32) {
    %c0_i32 = arith.constant 0 : i32
    return %arg0, %arg1 : i32, i32
  }
}

</mosaic_0001>

<bundles_post_ra>
// kernel: tpu_custom_call.1
= control target key start
LH: loop header
LB: loop body
LE: loop exit
PB: predicated region body
PF: predicated region fallthrough
CT: control target
= control target key end

     0   :  { %7 = vsyncpa [#allocation3], 0  ;;  %s148_s0 = inlined_call_operand.hbm [shape: f32[8,256], index: 0, kind: input, shape index: {}]   ;;  %s149_s1 = inlined_call_operand.vmem [shape: f32[8,1], index: 1, kind: input, shape index: {}]   ;;  %s150_s2 = inlined_call_operand.hbm [shape: f32[8,256], index: 2, kind: output, shape index: {}]  }
   0x1   :  { %8 = vsyncpa [#allocation4], 0  ;;  %s103_s9 = smov [#allocation2]   ;;  %s55_s13 = scalar_lea.hbm %s148_s0, 256 }
   0x2   :  { %s15_s10 = sshll.u32 %s103_s9, 4  ;;  %p56_p0 = scmp.ne.s32.totalorder %s148_s0, %s55_s13  ;;  %s16_s10 = int_to_ptr.vmem [resolvable:$true] %s15_s10 }
   0x3   :  { %p59_p1 = scmp.lt.u32.totalorder %s55_s13, %s148_s0 }
   0x5   :  { %p61_p2 = pnand %p59_p1, %p56_p0 }
   0x7   :  { %64 = shalt.err (!%p61_p2)
}
   0x8   :  { %s65_s18 = scalar_lea.vmem %s16_s10, 256  ;;  %p70_p4 = scmp.lt.s32.totalorder %s16_s10, %s16_s10 }
   0x9   :  { %p66_p3 = scmp.ne.s32.totalorder %s16_s10, %s65_s18  ;;  %p71_p5 = scmp.lt.s32.totalorder %s65_s18, %s65_s18 }
   0xb   :  { %p72_p6 = por %p71_p5, %p70_p4 }
   0xd   :  { %p73_p7 = pnand %p72_p6, %p66_p3 }
   0xf   :  { %76 = shalt.err (!%p73_p7)
}
  0x10   :  { %18 = dma.hbm_to_vmem [thread:$0]  %s148_s0, 256, %s16_s10, [#allocation3]  }
  0x11   :  { %99 = dma.done.wait [#allocation3], 256  }
  0x12   :  { %100 = vsyncadd [#allocation3], 4294967040  ;;  %v104_v0 = vmov 0   ;;  %v26_v1 = vld [vmem:[%s149_s1] sm:$0xff]  ;;  %v25_v3 = vld [vmem:[#allocation2 + $0x8] sm:$0xff]  ;;  %s105_s23 = smov [#allocation5]  }
  0x13   :  { %54 = vset.pattern.permute.xlu0 %v104_v0  ;;  %v24_v2 = vld [vmem:[#allocation2] sm:$0xff]  ;;  %s42_s24 = sshll.u32 %s105_s23, 4  ;;  %s43_s24 = int_to_ptr.vmem [resolvable:$true] %s42_s24 }
  0x14   :  { %29 = vperm.xlu0 %54, %v26_v1   ;;  %s77_s0 = scalar_lea.vmem %s43_s24, 256  ;;  %p82_p9 = scmp.lt.s32.totalorder %s43_s24, %s43_s24 }
  0x15   :  { %p78_p8 = scmp.ne.s32.totalorder %s43_s24, %s77_s0  ;;  %p83_p10 = scmp.lt.s32.totalorder %s77_s0, %s77_s0 }
  0x17   :  { %p84_p11 = por %p83_p10, %p82_p9 }
  0x19   :  { %p85_p12 = pnand %p84_p11, %p78_p8 }
  0x93   :  { %v30_v4 = vpop.permute.xlu0 %29 }
  0x94   :  { %v32_v5 = vadd.f32 %v30_v4, %v24_v2  ;;  %v33_v6 = vadd.f32 %v30_v4, %v25_v3 }
  0x96   :  { %34 = vst [vmem:[#allocation5] sm:$0xff] %v32_v5  ;;  %35 = vst [vmem:[#allocation5 + $0x8] sm:$0xff] %v33_v6 }
  0x97   :  { %88 = shalt.err (!%p85_p12)
}
  0x98   :  { %s89_s26 = scalar_lea.hbm %s150_s2, 256 }
  0x99   :  { %p90_p13 = scmp.ne.s32.totalorder %s150_s2, %s89_s26  ;;  %p93_p0 = scmp.lt.u32.totalorder %s89_s26, %s150_s2 }
  0x9b   :  { %p95_p1 = pnand %p93_p0, %p90_p13 }
  0x9d   :  { %98 = shalt.err (!%p95_p1)
}
  0x9e   :  { %45 = dma.vmem_to_hbm [thread:$0]  %s43_s24, 256, %s150_s2, [#allocation4]  }
  0x9f   :  { %101 = dma.done.wait [#allocation4], 256  }
  0xa0   :  { %102 = vsyncadd [#allocation4], 4294967040 }
  0xa1   :  { %49 = vsyncpa [#allocation3], 1 }
  0xa2   :  { %50 = vsyncpa [#allocation4], 1 }

</bundles_post_ra>
